<compile_context>
chip_gen: v6e
topology: v6e:2x2x1
jax: 0.10.0
libtpu: 0.0.40
codegen_flags: <defaults>
</compile_context>

<pallas_src>
import functools

import jax
import jax.numpy as jnp
from jax.experimental import pallas as pl
from jax.experimental.pallas import tpu as pltpu


def _round_up(a: int, b: int) -> int:
    return ((a + b - 1) // b) * b


# --------------------------------------------------------------------------- #
# Pallas kernel: quantum filter (product-state VQC), lane-dense layout.
# --------------------------------------------------------------------------- #
def _quanv_kernel(x_ref, theta_ref, out_ref, *, num_qubits, out_channels):
    # x_ref:     (nq, TM)            patch features; patches on the lane axis
    # theta_ref: (nq, 1)             trainable RY offsets (broadcast over lanes)
    # out_ref:   (out_channels, TM)  probabilities of the first out_channels states
    ang = x_ref[...] + theta_ref[...]          # full rotation angle x_i + theta_i
    c = jnp.cos(ang)                           # single transcendental per element
    # RY(a) applied to |0>:  P(1) = sin^2(a/2) = (1 - cos a)/2 ; P(0) = (1 + cos a)/2
    p1 = 0.5 - 0.5 * c                         # (nq, TM)
    p0 = 0.5 + 0.5 * c                         # (nq, TM)

    # P(state s) = prod_i [ bit_i(s) ? p1_i : p0_i ]   (little-endian qubit ordering,
    # same ordering as the previous kernel / Qiskit probability vectors).
    # num_qubits and out_channels are tiny static ints -> fully unrolled VPU products,
    # no MXU, no log/exp, exact probabilities (rows of the full table sum to 1).
    rows = []
    for state in range(out_channels):
        acc = None
        for q in range(num_qubits):
            factor = p1[q:q + 1, :] if ((state >> q) & 1) else p0[q:q + 1, :]
            acc = factor if acc is None else acc * factor
        rows.append(acc)
    out_ref[...] = rows[0] if out_channels == 1 else jnp.concatenate(rows, axis=0)


def quantum_filter(feat_t: jax.Array, theta: jax.Array, num_qubits: int,
                   out_channels: int) -> jax.Array:
    """Simulated quantum filter.

    feat_t: (num_qubits, M) feature-major patch matrix (M = B * L patches).
    Returns (out_channels, M): probabilities of the first `out_channels` basis states.
    """
    nq, M = feat_t.shape
    assert nq == num_qubits

    # Lane tile: patches sit on the 128-wide lane axis.  Keep >=2 grid steps when the
    # problem is large enough (v7x has 2 TensorCores), cap at 2048 lanes.  Tiles are
    # (nq, TM) + (out_ch, TM) f32 << 1 MiB double-buffered, far below even v7x's
    # 64 MiB VMEM, so no explicit vmem_limit_bytes is needed.
    M128 = _round_up(M, 128)
    if M128 <= 128:
        TM = M128
    else:
        TM = min(2048, _round_up(M128 // 2, 128))
    M_pad = _round_up(M, TM)

    x = feat_t.astype(jnp.float32)
    if M_pad != M:
        x = jnp.pad(x, ((0, 0), (0, M_pad - M)))
    theta_col = theta.reshape(num_qubits, 1).astype(jnp.float32)

    kernel = functools.partial(_quanv_kernel, num_qubits=num_qubits,
                               out_channels=out_channels)
    out = pl.pallas_call(
        kernel,
        out_shape=jax.ShapeDtypeStruct((out_channels, M_pad), jnp.float32),
        grid_spec=pltpu.PrefetchScalarGridSpec(
            num_scalar_prefetch=0,
            grid=(M_pad // TM,),
            in_specs=[
                pl.BlockSpec((nq, TM), lambda i: (0, i)),
                pl.BlockSpec((nq, 1), lambda i: (0, 0)),   # constant block -> DMA'd once
            ],
            out_specs=pl.BlockSpec((out_channels, TM), lambda i: (0, i)),
        ),
        compiler_params=pltpu.CompilerParams(
            dimension_semantics=("parallel",),
        ),
    )(x, theta_col)

    return out[:, :M]


# --------------------------------------------------------------------------- #
# Patch extraction (feature-major, so no extra transpose of the big patch matrix).
# --------------------------------------------------------------------------- #
def _unfold_feature_major(x: jax.Array, k: int, stride: int, padding: int):
    """General F.unfold equivalent producing (C*k*k, B*Ho*Wo)."""
    B, C, H, W = x.shape
    xp = jnp.pad(x, ((0, 0), (0, 0), (padding, padding), (padding, padding)))
    Ho = (H + 2 * padding - k) // stride + 1
    Wo = (W + 2 * padding - k) // stride + 1
    idx_h = (jnp.arange(Ho) * stride)[:, None] + jnp.arange(k)[None, :]   # (Ho, kh)
    idx_w = (jnp.arange(Wo) * stride)[:, None] + jnp.arange(k)[None, :]   # (Wo, kw)
    p = xp[:, :, idx_h, :]            # (B, C, Ho, kh, Wp)
    p = p[:, :, :, :, idx_w]          # (B, C, Ho, kh, Wo, kw)
    p = jnp.transpose(p, (1, 3, 5, 0, 2, 4))   # (C, kh, kw, B, Ho, Wo)
    return p, Ho, Wo


class QuanvolutionPallas:
    """Quanvolution layer: a (simulated) quantum filter applied convolutionally."""

    def __init__(self, num_qubits: int, stride: int, padding: int, out_channels: int,
                 theta: jax.Array):
        if out_channels > 2 ** num_qubits:
            raise ValueError("The number of output channels must be lower than 2 ^ num_qubits!")
        self.num_qubits = num_qubits
        self.stride = stride
        self.padding = padding
        self.out_channels = out_channels
        self.theta = theta  # VQC weights, shape (num_qubits,)

    def __call__(self, x: jax.Array) -> jax.Array:
        k = int(round(self.num_qubits ** 0.5))
        B, C, H, W = x.shape
        assert C * k * k == self.num_qubits, "C * k * k must equal num_qubits"
        if self.stride == k and self.padding == 0 and H % k == 0 and W % k == 0:
            # Standard quanvolution config: pure space-to-depth reshape/transpose
            # (no gathers, no materialized unfold intermediates).
            Ho, Wo = H // k, W // k
            p = x.reshape(B, C, Ho, k, Wo, k)
            p = jnp.transpose(p, (1, 3, 5, 0, 2, 4))         # (C, kh, kw, B, Ho, Wo)
        else:
            p, Ho, Wo = _unfold_feature_major(x, k, self.stride, self.padding)
        feat_t = p.reshape(C * k * k, B * Ho * Wo)           # (nq, M) feature-major
        probs = quantum_filter(feat_t, self.theta, self.num_qubits,
                               self.out_channels)            # (out_ch, B*Ho*Wo)
        out = probs.reshape(self.out_channels, B, Ho, Wo)
        return jnp.transpose(out, (1, 0, 2, 3))              # (B, out_ch, Ho, Wo)


# --------------------------------------------------------------------------- #
# Pure-JAX reference (matches the original log/exp-free math analytically).
# --------------------------------------------------------------------------- #
def _reference_forward(x, theta, num_qubits, stride, padding, out_channels):
    k = int(round(num_qubits ** 0.5))
    B, C, H, W = x.shape
    xp = jnp.pad(x, ((0, 0), (0, 0), (padding, padding), (padding, padding)))
    Ho = (H + 2 * padding - k) // stride + 1
    Wo = (W + 2 * padding - k) // stride + 1
    idx_h = (jnp.arange(Ho) * stride)[:, None] + jnp.arange(k)[None, :]
    idx_w = (jnp.arange(Wo) * stride)[:, None] + jnp.arange(k)[None, :]
    p = xp[:, :, idx_h, :][:, :, :, :, idx_w]               # (B, C, Ho, kh, Wo, kw)
    p = jnp.transpose(p, (0, 1, 3, 5, 2, 4))                # (B, C, kh, kw, Ho, Wo)
    patches = p.reshape(B, C * k * k, Ho * Wo).transpose(0, 2, 1).reshape(-1, C * k * k)
    ang = 0.5 * (patches + theta[None, :])
    p1 = jnp.sin(ang) ** 2
    p0 = jnp.cos(ang) ** 2
    states = jnp.arange(2 ** num_qubits)
    bits = ((states[None, :] >> jnp.arange(num_qubits)[:, None]) & 1).astype(jnp.float32)
    probs = jnp.prod(jnp.where(bits[None, :, :] == 1.0, p1[:, :, None], p0[:, :, None]),
                     axis=1)                                 # (M, 2**nq)
    out = probs[:, :out_channels].reshape(B, Ho * Wo, out_channels)
    return jnp.transpose(out, (0, 2, 1)).reshape(B, out_channels, Ho, Wo)


# --------------------------------------------------------------------------- #
# Demo
# --------------------------------------------------------------------------- #
if __name__ == "__main__":
    key = jax.random.PRNGKey(0)
    k_x, k_theta = jax.random.split(key)

    # Module-consistent shapes: num_qubits=4 -> 2x2 patches, C must be 1.
    B, C, H, W = 2, 1, 16, 16
    num_qubits = 4
    stride, padding = 2, 0
    out_channels = 4

    x = jax.random.uniform(k_x, (B, C, H, W), dtype=jnp.float32)
    theta = jax.random.uniform(k_theta, (num_qubits,), dtype=jnp.float32,
                               minval=0.0, maxval=2.0 * jnp.pi)

    layer = QuanvolutionPallas(num_qubits, stride, padding, out_channels, theta)
    y = layer(x)
    jax.block_until_ready(y)

    assert y.shape == (B, out_channels, 8, 8), y.shape
    assert bool(jnp.all(jnp.isfinite(y)))
    y_ref = _reference_forward(x, theta, num_qubits, stride, padding, out_channels)
    assert bool(jnp.allclose(y, y_ref, atol=1e-5, rtol=1e-5)), \
        float(jnp.max(jnp.abs(y - y_ref)))
    print("KERNEL_OK")
</pallas_src>

<mosaic_0001>
module attributes {stable_mosaic.version = 11 : i64} {
  func.func @_quanv_kernel(%arg0: i32, %arg1: memref<4x128xf32, #tpu.memory_space<vmem>>, %arg2: memref<4x1xf32, #tpu.memory_space<vmem>>, %arg3: memref<4x128xf32, #tpu.memory_space<vmem>>) attributes {dimension_semantics = [#tpu.dimension_semantics<parallel>], iteration_bounds = array<i64: 1>, scalar_prefetch = 0 : i64, scratch_operands = 0 : i64, tpu.core_type = #tpu.core_type<tc>, window_params = [{transform_indices = @transform_0, window_bounds = array<i64: 4, 128>}, {pipeline_mode = #tpu.pipeline_mode<synchronous>, transform_indices = @transform_1, window_bounds = array<i64: 4, 1>}, {transform_indices = @transform_2, window_bounds = array<i64: 4, 128>}]} {
    %c0 = arith.constant 0 : index
    %c0_0 = arith.constant 0 : index
    %0 = vector.load %arg1[%c0, %c0_0] : memref<4x128xf32, #tpu.memory_space<vmem>>, vector<4x128xf32>
    %c0_1 = arith.constant 0 : index
    %c0_2 = arith.constant 0 : index
    %1 = vector.load %arg2[%c0_1, %c0_2] : memref<4x1xf32, #tpu.memory_space<vmem>>, vector<4x1xf32>
    %2 = vector.broadcast %1 : vector<4x1xf32> to vector<4x128xf32>
    %3 = arith.addf %0, %2 : vector<4x128xf32>
    %4 = math.cos %3 : vector<4x128xf32>
    %cst = arith.constant 5.000000e-01 : f32
    %5 = vector.broadcast %cst : f32 to vector<4x128xf32>
    %6 = arith.mulf %5, %4 : vector<4x128xf32>
    %cst_3 = arith.constant 5.000000e-01 : f32
    %7 = vector.broadcast %cst_3 : f32 to vector<4x128xf32>
    %8 = arith.subf %7, %6 : vector<4x128xf32>
    %cst_4 = arith.constant 5.000000e-01 : f32
    %9 = vector.broadcast %cst_4 : f32 to vector<4x128xf32>
    %10 = arith.mulf %9, %4 : vector<4x128xf32>
    %cst_5 = arith.constant 5.000000e-01 : f32
    %11 = vector.broadcast %cst_5 : f32 to vector<4x128xf32>
    %12 = arith.addf %11, %10 : vector<4x128xf32>
    %13 = vector.extract_strided_slice %12 {offsets = [0, 0], sizes = [1, 128], strides = [1, 1]} : vector<4x128xf32> to vector<1x128xf32>
    %14 = vector.extract_strided_slice %12 {offsets = [1, 0], sizes = [1, 128], strides = [1, 1]} : vector<4x128xf32> to vector<1x128xf32>
    %15 = arith.mulf %13, %14 : vector<1x128xf32>
    %16 = vector.extract_strided_slice %12 {offsets = [2, 0], sizes = [1, 128], strides = [1, 1]} : vector<4x128xf32> to vector<1x128xf32>
    %17 = arith.mulf %15, %16 : vector<1x128xf32>
    %18 = vector.extract_strided_slice %12 {offsets = [3, 0], sizes = [1, 128], strides = [1, 1]} : vector<4x128xf32> to vector<1x128xf32>
    %19 = arith.mulf %17, %18 : vector<1x128xf32>
    %20 = vector.extract_strided_slice %8 {offsets = [0, 0], sizes = [1, 128], strides = [1, 1]} : vector<4x128xf32> to vector<1x128xf32>
    %21 = vector.extract_strided_slice %12 {offsets = [1, 0], sizes = [1, 128], strides = [1, 1]} : vector<4x128xf32> to vector<1x128xf32>
    %22 = arith.mulf %20, %21 : vector<1x128xf32>
    %23 = vector.extract_strided_slice %12 {offsets = [2, 0], sizes = [1, 128], strides = [1, 1]} : vector<4x128xf32> to vector<1x128xf32>
    %24 = arith.mulf %22, %23 : vector<1x128xf32>
    %25 = vector.extract_strided_slice %12 {offsets = [3, 0], sizes = [1, 128], strides = [1, 1]} : vector<4x128xf32> to vector<1x128xf32>
    %26 = arith.mulf %24, %25 : vector<1x128xf32>
    %27 = vector.extract_strided_slice %12 {offsets = [0, 0], sizes = [1, 128], strides = [1, 1]} : vector<4x128xf32> to vector<1x128xf32>
    %28 = vector.extract_strided_slice %8 {offsets = [1, 0], sizes = [1, 128], strides = [1, 1]} : vector<4x128xf32> to vector<1x128xf32>
    %29 = arith.mulf %27, %28 : vector<1x128xf32>
    %30 = vector.extract_strided_slice %12 {offsets = [2, 0], sizes = [1, 128], strides = [1, 1]} : vector<4x128xf32> to vector<1x128xf32>
    %31 = arith.mulf %29, %30 : vector<1x128xf32>
    %32 = vector.extract_strided_slice %12 {offsets = [3, 0], sizes = [1, 128], strides = [1, 1]} : vector<4x128xf32> to vector<1x128xf32>
    %33 = arith.mulf %31, %32 : vector<1x128xf32>
    %34 = vector.extract_strided_slice %8 {offsets = [0, 0], sizes = [1, 128], strides = [1, 1]} : vector<4x128xf32> to vector<1x128xf32>
    %35 = vector.extract_strided_slice %8 {offsets = [1, 0], sizes = [1, 128], strides = [1, 1]} : vector<4x128xf32> to vector<1x128xf32>
    %36 = arith.mulf %34, %35 : vector<1x128xf32>
    %37 = vector.extract_strided_slice %12 {offsets = [2, 0], sizes = [1, 128], strides = [1, 1]} : vector<4x128xf32> to vector<1x128xf32>
    %38 = arith.mulf %36, %37 : vector<1x128xf32>
    %39 = vector.extract_strided_slice %12 {offsets = [3, 0], sizes = [1, 128], strides = [1, 1]} : vector<4x128xf32> to vector<1x128xf32>
    %40 = arith.mulf %38, %39 : vector<1x128xf32>
    %41 = tpu.concatenate %19, %26, %33, %40 in 0 : vector<1x128xf32>, vector<1x128xf32>, vector<1x128xf32>, vector<1x128xf32> -> vector<4x128xf32>
    %c0_6 = arith.constant 0 : index
    %c0_7 = arith.constant 0 : index
    %42 = vector.load %arg3[%c0_6, %c0_7] : memref<4x128xf32, #tpu.memory_space<vmem>>, vector<4x128xf32>
    tpu.vector_store %arg3[%c0_6, %c0_7], %41 {strides = array<i32>} : memref<4x128xf32, #tpu.memory_space<vmem>>, vector<4x128xf32>,
    return
  }
  func.func @transform_0(%arg0: i32) -> (i32, i32) {
    %c0_i32 = arith.constant 0 : i32
    %c0_i32_0 = arith.constant 0 : i32
    return %c0_i32, %arg0 : i32, i32
  }
  func.func @transform_1(%arg0: i32) -> (i32, i32) {
    %c0_i32 = arith.constant 0 : i32
    %c0_i32_0 = arith.constant 0 : i32
    %c0_i32_1 = arith.constant 0 : i32
    return %c0_i32, %c0_i32_0 : i32, i32
  }
  func.func @transform_2(%arg0: i32) -> (i32, i32) {
    %c0_i32 = arith.constant 0 : i32
    %c0_i32_0 = arith.constant 0 : i32
    return %c0_i32, %arg0 : i32, i32
  }
}

</mosaic_0001>

<bundles_post_ra>
// kernel: tpu_custom_call.1
= control target key start
LH: loop header
LB: loop body
LE: loop exit
PB: predicated region body
PF: predicated region fallthrough
CT: control target
= control target key end

     0   :  { %v221_v1 = vmov 0   ;;  %s274_s0 = inlined_call_operand.vmem [shape: f32[4,128], index: 0, kind: input, shape index: {}]   ;;  %s275_s1 = inlined_call_operand.vmem [shape: f32[4,1], index: 1, kind: input, shape index: {}]   ;;  %s276_s2 = inlined_call_operand.hbm [shape: f32[4,128], index: 2, kind: output, shape index: {}]  }
   0x1   :  { %v13_v0 = vld [vmem:[%s275_s1] sm:$0xf]  ;;  %194 = vset.pattern.permute.xlu0 %v221_v1 }
   0x2   :  { %16 = vperm.xlu0 %194, %v13_v0  }
   0x3   :  { %7 = vsyncpa [#allocation3], 0  ;;  %v12_v2 = vld [vmem:[%s274_s0] sm:$0xf]  ;;  %v222_v15 = vmov 683565275  }
   0x4   :  { %v223_v17 = vmov 2475754826   ;;  %v224_v20 = vmov 2131351028   ;;  %v225_v23 = vmov 2102212464  }
   0x5   :  { %v226_v26 = vmov 920167782   ;;  %v227_v29 = vmov 1326507024   ;;  %vm157_vm13 = vcmask 1040384   ;;  %vm159_vm14 = vcmask 1041408  }
   0x6   :  { %s228_s0 = smov [#allocation2]   ;;  %vm161_vm15 = vcmask 1042432  }
   0x7   :  { %s170_s1 = sshll.u32 %s228_s0, 4  ;;  %s171_s1 = int_to_ptr.vmem [resolvable:$true] %s170_s1 }
   0x8   :  { %s199_s13 = scalar_lea.vmem %s171_s1, 64  ;;  %p204_p1 = scmp.lt.s32.totalorder %s171_s1, %s171_s1 }
   0x9   :  { %p200_p0 = scmp.ne.s32.totalorder %s171_s1, %s199_s13  ;;  %p205_p2 = scmp.lt.s32.totalorder %s199_s13, %s199_s13 }
   0xb   :  { %p206_p3 = por %p205_p2, %p204_p1 }
   0xd   :  { %p207_p4 = pnand %p206_p3, %p200_p0 }
  0x7d   :  { %v17_v3 = vpop.permute.xlu0 %16 }
  0x7e   :  { %v250_v4 = vadd.f32 %v17_v3, %v12_v2 }
  0x80   :  { %v23_v5 = vand.u32 2139095040, %v250_v4  ;;  %v20_v9 = vand.u32 2147483647, %v250_v4  ;;  %vm22_vm7 = vcmp.lt.s32.totalorder %v250_v4, 0  ;;  %vm112_vm12 = vweird.f32 %v250_v4 }
  0x82   :  { %v24_v6 = vshrl.u32 %v23_v5, 23  ;;  %v27_v12 = vand.u32 8388607, %v20_v9  ;;  %vm21_vm8 = vcmp.le.f32.partialorder %v20_v9, 0.7853982 }
  0x84   :  { %v178_v7 = vadd.s32 4294967169, %v24_v6  ;;  %v28_v31 = vor.u32 8388608, %v27_v12 }
  0x86   :  { %v30_v8 = vadd.s32 1, %v178_v7  ;;  %v68_v45 = vshll.u32 %v28_v31, 8 }
  0x88   :  { %vm31_vm0 = vcmp.gt.s32.totalorder %v30_v8, 0 }
  0x89   :  { %v32_v10 = vsel %vm31_vm0, %v30_v8, 0 }
  0x8a   :  { %v34_v11 = vand.u32 31, %v32_v10  ;;  %v33_v14 = vshrl.u32 %v32_v10, 5 }
  0x8c   :  { %v35_v13 = vsub.s32 32, %v34_v11  ;;  %v37_v16 = vshll.u32 %v222_v15, %v34_v11  ;;  %v40_v18 = vshll.u32 %v223_v17, %v34_v11  ;;  %v43_v22 = vshll.u32 %v224_v20, %v34_v11 }
  0x8d   :  { %v46_v25 = vshll.u32 %v225_v23, %v34_v11  ;;  %v49_v28 = vshll.u32 %v226_v26, %v34_v11  ;;  %vm52_vm1 = vcmp.lt.s32.totalorder %v33_v14, 1  ;;  %vm55_vm2 = vcmp.lt.s32.totalorder %v33_v14, 4 }
  0x8e   :  { %v38_v19 = vshrl.u32 %v223_v17, %v35_v13  ;;  %v41_v21 = vshrl.u32 %v224_v20, %v35_v13  ;;  %v44_v24 = vshrl.u32 %v225_v23, %v35_v13  ;;  %v47_v27 = vshrl.u32 %v226_v26, %v35_v13 }
  0x8f   :  { %v50_v30 = vshrl.u32 %v227_v29, %v35_v13  ;;  %v36_v40 = vshrl.u32 %v222_v15, %v35_v13  ;;  %vm54_vm3 = vcmp.lt.s32.totalorder %v33_v14, 3  ;;  %vm53_vm4 = vcmp.lt.s32.totalorder %v33_v14, 2 }
  0x90   :  { %v39_v32 = vor.u32 %v38_v19, %v37_v16  ;;  %v42_v33 = vor.u32 %v41_v21, %v40_v18  ;;  %v45_v34 = vor.u32 %v44_v24, %v43_v22  ;;  %v48_v35 = vor.u32 %v47_v27, %v46_v25 }
  0x91   :  { %v51_v36 = vor.u32 %v50_v30, %v49_v28 }
  0x92   :  { %v57_v37 = vsel %vm55_vm2, %v45_v34, 2102212464  ;;  %v60_v38 = vsel %vm52_vm1, %v39_v32, %v42_v33  ;;  %v64_v39 = vsel %vm52_vm1, %v42_v33, %v45_v34  ;;  %v61_v41 = vsel %vm55_vm2, %v48_v35, 920167782 }
  0x93   :  { %v65_v42 = vsel %vm55_vm2, %v51_v36, 1326507024  ;;  %v62_v43 = vsel %vm54_vm3, %v45_v34, %v61_v41  ;;  %v56_v46 = vsel %vm52_vm1, %v36_v40, %v39_v32  ;;  %v58_v47 = vsel %vm54_vm3, %v42_v33, %v57_v37 }
  0x94   :  { %v66_v44 = vsel %vm54_vm3, %v48_v35, %v65_v42  ;;  %v63_v48 = vsel %vm53_vm4, %v60_v38, %v62_v43  ;;  %v59_v54 = vsel %vm53_vm4, %v56_v46, %v58_v47 }
  0x95   :  { %v67_v49 = vsel %vm53_vm4, %v64_v39, %v66_v44  ;;  %v259_v52 = vmul.u32.u64.low %v68_v45, %v63_v48  ;;  %v260_v53 = vmul.u32.u64.high %v68_v45, %v63_v48, %v259_v52  ;;  %v75_v56 = vmul.u32 %v68_v45, %v59_v54 }
  0x96   :  { %v256_v50 = vmul.u32.u64.low %v68_v45, %v67_v49  ;;  %v257_v51 = vmul.u32.u64.high %v68_v45, %v67_v49, %v256_v50 }
  0x97   :  { %v78_v55 = vadd.s32 1, %v260_v53 }
  0x98   :  { %vm77_vm5 = vc.u32 %v257_v51, %v259_v52  ;;  %v76_v5 = vadd.s32 %v259_v52, %v257_v51 }
  0x99   :  { %v79_v57 = vsel %vm77_vm5, %v78_v55, %v260_v53 }
  0x9a   :  { %v80_v58 = vadd.s32 %v79_v57, %v75_v56 }
  0x9c   :  { %v81_v59 = vadd.s32 536870912, %v80_v58 }
  0x9e   :  { %v82_v60 = vshrl.u32 %v81_v59, 30 }
  0xa0   :  { %v83_v61 = vshll.u32 %v82_v60, 30  ;;  %v106_v21 = vsub.s32 4, %v82_v60 }
  0xa2   :  { %v84_v62 = vsub.s32 %v80_v58, %v83_v61  ;;  %v107_v22 = vsel %vm22_vm7, %v106_v21, %v82_v60 }
  0xa3   :  { %v109_v23 = vsel %vm21_vm8, 0, %v107_v22 }
  0xa4   :  { %v86_v63 = vsub.s32 0, %v84_v62  ;;  %v113_v24 = vand.u32 3, %v109_v23 }
  0xa6   :  { %v179_v0 = vmin.u32 %v86_v63, %v84_v62  ;;  %vm118_vm9 = vcmp.eq.s32.totalorder %v113_v24, 2  ;;  %vm115_vm10 = vcmp.eq.s32.totalorder %v113_v24, 0  ;;  %vm114_vm11 = vcmp.lt.s32.totalorder %v113_v24, 2 }
  0xa8   :  { %v88_v1 = vclz %v179_v0 }
  0xaa   :  { %v180_v2 = vadd.s32 4294967294, %v88_v1 }
  0xac   :  { %vm181_vm6 = vcmp.lt.s32.totalorder %v180_v2, 0 }
  0xad   :  { %v91_v3 = vsel %vm181_vm6, 0, %v180_v2 }
  0xae   :  { %v92_v6 = vsub.s32 32, %v91_v3  ;;  %v96_v7 = vsub.s32 4294967266, %v91_v3  ;;  %v93_v8 = vshll.u32 %v84_v62, %v91_v3 }
  0xb0   :  { %v94_v10 = vshrl.u32 %v76_v5, %v92_v6  ;;  %v97_v11 = vadd.s32 127, %v96_v7 }
  0xb2   :  { %v95_v12 = vor.u32 %v94_v10, %v93_v8  ;;  %v98_v13 = vshll.u32 %v97_v11, 23 }
  0xb4   :  { %v99_v14 = vor.u32 4788187, %v98_v13  ;;  %v102_v16 = vcvt.s32.f32 %v95_v12 }
  0xb6   :  { %v100_v15 = vand.u32 2147483647, %v99_v14 }
  0xb8   :  { %v103_v17 = vmul.f32 %v102_v16, %v100_v15 }
  0xba   :  { %v104_v18 = vxor.u32 2147483648, %v103_v17 }
  0xbc   :  { %v105_v19 = vsel %vm22_vm7, %v104_v18, %v103_v17 }
  0xbd   :  { %v108_v20 = vsel %vm21_vm8, %v250_v4, %v105_v19 }
  0xbe   :  { %195 = vcosq.f32 %v108_v20 }
  0xbf   :  { %197 = vsinq.f32 %v108_v20 }
  0xcb   :  { %v196_v25 = vpop.eup %195 }
  0xcc   :  { %v198_v26 = vpop.eup %197  ;;  %v119_v27 = vxor.u32 2147483648, %v196_v25 }
  0xcd   :  { %v116_v28 = vxor.u32 2147483648, %v198_v26 }
  0xce   :  { %v120_v29 = vsel %vm118_vm9, %v119_v27, %v198_v26 }
  0xcf   :  { %v117_v30 = vsel %vm115_vm10, %v196_v25, %v116_v28 }
  0xd0   :  { %v121_v9 = vsel %vm114_vm11, %v117_v30, %v120_v29 }
  0xd1   :  { %v122_v31 = vsel %vm112_vm12, nan, %v121_v9 }
  0xd2   :  { %v123_v32 = vmul.f32 0.5, %v122_v31 }
  0xd4   :  { %v125_v33 = vadd.f32 0.5, %v123_v32  ;;  %v124_v34 = vsub.f32 0.5, %v123_v32 }
  0xd6   :  { %v127_v35 = vrot.slane %v125_v33, 1  ;;  %v140_v36 = vrot.slane %v124_v34, 1  ;;  %v130_v37 = vrot.slane %v125_v33, 2  ;;  %v133_v42 = vrot.slane %v125_v33, 3 }
  0xd8   :  { %v129_v38 = vmul.f32 %v127_v35, %v125_v33  ;;  %v136_v39 = vmul.f32 %v127_v35, %v124_v34  ;;  %v142_v40 = vmul.f32 %v140_v36, %v125_v33  ;;  %v145_v41 = vmul.f32 %v140_v36, %v124_v34 }
  0xda   :  { %v132_v43 = vmul.f32 %v130_v37, %v129_v38  ;;  %v137_v44 = vmul.f32 %v136_v39, %v130_v37  ;;  %v143_v45 = vmul.f32 %v142_v40, %v130_v37  ;;  %v146_v46 = vmul.f32 %v145_v41, %v130_v37 }
  0xdc   :  { %v138_v47 = vmul.f32 %v137_v44, %v133_v42  ;;  %v144_v48 = vmul.f32 %v143_v45, %v133_v42  ;;  %v147_v4 = vmul.f32 %v146_v46, %v133_v42  ;;  %v135_v49 = vmul.f32 %v133_v42, %v132_v43 }
  0xde   :  { %v149_v50 = vrot.slane %v138_v47, 7  ;;  %v152_v51 = vrot.slane %v144_v48, 6  ;;  %v155_v52 = vrot.slane %v147_v4, 5 }
  0xe0   :  { %v158_v53 = vsel %vm157_vm13, %v135_v49, %v149_v50 }
  0xe1   :  { %v160_v54 = vsel %vm159_vm14, %v158_v53, %v152_v51 }
  0xe2   :  { %v162_v55 = vsel %vm161_vm15, %v160_v54, %v155_v52 }
  0xe3   :  { %163 = vst [vmem:[#allocation2] sm:$0xf] %v162_v55 }
  0xe4   :  { %210 = shalt.err (!%p207_p4)
}
  0xe5   :  { %173 = dma.vmem_to_hbm [thread:$0]  %s171_s1, 64, %s276_s2, [#allocation3]  }
  0xe6   :  { %219 = dma.done.wait [#allocation3], 64  }
  0xe7   :  { %220 = vsyncadd [#allocation3], 4294967232 }
  0xe8   :  { %177 = vsyncpa [#allocation3], 1 }

</bundles_post_ra>
